<compile_context>
chip_gen: v5e
topology: v5e:2x2
jax: 0.10.0
libtpu: 0.0.40
codegen_flags: <defaults>
</compile_context>

<pallas_src>
import jax
import jax.numpy as jnp
from jax.experimental import pallas as pl
from jax.experimental.pallas import tpu as pltpu


# ----------------------------------------------------------------------------
# Kernel: fused twin-Q MLP (3+1+1 matmuls, biases, ReLUs) on one batch row tile.
# Rows of a partially out-of-bounds last tile are computed on padded garbage but
# never written back (rows are independent; do NOT add cross-row reductions).
# ----------------------------------------------------------------------------
def _qnet_kernel(s_ref, c_ref, a_ref, slab_ref, q_ref):
    S = s_ref.shape[1]
    C = c_ref.shape[1]
    A = a_ref.shape[1]
    d_in = S + C + A
    H2 = slab_ref.shape[1]          # 2 * hidden_dim

    # Static slices into the packed slab (zero runtime cost: compile-time offsets).
    w1s = slab_ref[0:S, :]                              # (S, 2H)
    w1c = slab_ref[S:S + C, :]                          # (C, 2H)
    w1a = slab_ref[S + C:d_in, :]                       # (A, 2H)
    w2f = slab_ref[d_in:d_in + H2, :]                   # (2H, 2H) blockdiag(w2, w5)
    w3f = slab_ref[d_in + H2:d_in + 2 * H2, :]          # (2H, 2H) padded heads
    b1f = slab_ref[d_in + 2 * H2 + 0:d_in + 2 * H2 + 1, :]   # (1, 2H)
    b2f = slab_ref[d_in + 2 * H2 + 1:d_in + 2 * H2 + 2, :]   # (1, 2H)
    b3f = slab_ref[d_in + 2 * H2 + 2:d_in + 2 * H2 + 3, :]   # (1, 2H), lanes 0-1 live

    # Layer 1 (both heads at once): xu @ [W1 || W4] without materializing xu.
    h = jnp.dot(s_ref[...], w1s, preferred_element_type=jnp.float32)
    h = h + jnp.dot(c_ref[...], w1c, preferred_element_type=jnp.float32)
    h = h + jnp.dot(a_ref[...], w1a, preferred_element_type=jnp.float32)
    h = jnp.maximum(h + b1f, 0.0)

    # Layer 2 (both heads): block-diagonal [[w2, 0], [0, w5]].
    h = jnp.maximum(
        jnp.dot(h, w2f, preferred_element_type=jnp.float32) + b2f, 0.0)

    # Output heads: W3f is (2H, 2H) with only cols 0-1 nonzero -> full-width
    # MXU matmul (same cost as N=2), slice the two live lanes before storing.
    q = jnp.dot(h, w3f, preferred_element_type=jnp.float32)
    q_ref[...] = q[:, 0:2] + b3f[:, 0:2]


# ----------------------------------------------------------------------------
# Parameter construction (matches torch xavier_uniform_ / zero bias, stored
# transposed as (in_features, out_features)).
# ----------------------------------------------------------------------------
def _xavier_uniform(key, fan_in, fan_out, gain=1.0):
    bound = gain * jnp.sqrt(6.0 / (fan_in + fan_out))
    return jax.random.uniform(key, (fan_in, fan_out), jnp.float32, -bound, bound)


def init_qnetwork_params(key, num_inputs, num_actions, hidden_dim):
    d_in = num_inputs + num_actions
    keys = jax.random.split(key, 6)
    return {
        "w1": _xavier_uniform(keys[0], d_in, hidden_dim),
        "b1": jnp.zeros((1, hidden_dim), jnp.float32),
        "w2": _xavier_uniform(keys[1], hidden_dim, hidden_dim),
        "b2": jnp.zeros((1, hidden_dim), jnp.float32),
        "w3": _xavier_uniform(keys[2], hidden_dim, 1),
        "b3": jnp.zeros((1, 1), jnp.float32),
        "w4": _xavier_uniform(keys[3], d_in, hidden_dim),
        "b4": jnp.zeros((1, hidden_dim), jnp.float32),
        "w5": _xavier_uniform(keys[4], hidden_dim, hidden_dim),
        "b5": jnp.zeros((1, hidden_dim), jnp.float32),
        "w6": _xavier_uniform(keys[5], hidden_dim, 1),
        "b6": jnp.zeros((1, 1), jnp.float32),
    }


def pack_qnetwork_params(params):
    """One-time fusion of the twin heads into a single (d_in+4H+3, 2H) slab.

    Run this once per parameter update (jit it together with the optimizer
    step) -- NOT inside the per-call hot path.
    Layout: [W1f ; W2f ; W3f(zero-padded to 2H cols) ; b1f ; b2f ; b3f].
    """
    H = params["w1"].shape[1]
    H2 = 2 * H

    w1f = jnp.concatenate([params["w1"], params["w4"]], axis=1)      # (d_in, 2H)

    zHH = jnp.zeros((H, H), jnp.float32)
    w2f = jnp.block([[params["w2"], zHH], [zHH, params["w5"]]])      # (2H, 2H)

    zH1 = jnp.zeros((H, 1), jnp.float32)
    w3_2 = jnp.block([[params["w3"], zH1], [zH1, params["w6"]]])     # (2H, 2)
    w3f = jnp.concatenate(
        [w3_2, jnp.zeros((H2, H2 - 2), jnp.float32)], axis=1)        # (2H, 2H)

    b1f = jnp.concatenate([params["b1"], params["b4"]], axis=1)      # (1, 2H)
    b2f = jnp.concatenate([params["b2"], params["b5"]], axis=1)      # (1, 2H)
    b3f = jnp.concatenate(
        [params["b3"], params["b6"], jnp.zeros((1, H2 - 2), jnp.float32)],
        axis=1)                                                      # (1, 2H)

    return jnp.concatenate([w1f, w2f, w3f, b1f, b2f, b3f], axis=0)   # (d_in+4H+3, 2H)


# ----------------------------------------------------------------------------
# Forward wrapper.
# ----------------------------------------------------------------------------
def _round_up(x, m):
    return ((x + m - 1) // m) * m


def _num_tensorcores():
    """2 on v7x-class chips (two TensorCores), 1 on v5e/v6e.  Never raises."""
    try:
        kind = jax.devices()[0].device_kind.lower()
        if "v7" in kind:
            return 2
    except Exception:
        pass
    return 1


def qnetwork_forward(slab, state, context, action, *, block_b=8192):
    """Pallas QNetwork.forward -> (q1, q2), each (B, 1) float32."""
    state = state.astype(jnp.float32)
    context = context.astype(jnp.float32)
    action = action.astype(jnp.float32)

    B, S = state.shape
    C = context.shape[1]
    A = action.shape[1]

    # Row tile policy (kernel is fixed-overhead bound, VMEM is never the limit
    # here: per-tile footprint ~TB*1KB):
    #  * single-TC chips (v5e/v6e): whole batch in ONE grid step up to block_b.
    #  * 2-TC chips (v7x) with B >= 256: exactly 2 grid steps so the
    #    "parallel" grid axis shards across both TensorCores.
    if _num_tensorcores() > 1 and B >= 256:
        TB = min(_round_up(pl.cdiv(B, 2), 8), block_b)
    else:
        TB = min(B, block_b)
    grid = (pl.cdiv(B, TB),)

    def row_spec(d):
        return pl.BlockSpec((TB, d), lambda i: (i, 0))

    # Whole slab (~40 KiB at H=32) is VMEM-resident; constant block index means
    # it is not re-fetched across grid steps.
    slab_spec = pl.BlockSpec(slab.shape, lambda i: (0, 0))

    q = pl.pallas_call(
        _qnet_kernel,
        out_shape=jax.ShapeDtypeStruct((B, 2), jnp.float32),
        grid=grid,
        in_specs=[row_spec(S), row_spec(C), row_spec(A), slab_spec],
        out_specs=pl.BlockSpec((TB, 2), lambda i: (i, 0)),
        compiler_params=pltpu.CompilerParams(
            dimension_semantics=("parallel",)),
    )(state, context, action, slab)

    return q[:, 0:1], q[:, 1:2]


# ----------------------------------------------------------------------------
# Pure-JAX reference (unfused twin heads, same math as the PyTorch module).
# ----------------------------------------------------------------------------
def _reference_forward(params, state, context, action):
    xu = jnp.concatenate([state, context, action], axis=1)
    h = jax.nn.relu(xu @ params["w1"] + params["b1"])
    h = jax.nn.relu(h @ params["w2"] + params["b2"])
    q1 = h @ params["w3"] + params["b3"]
    g = jax.nn.relu(xu @ params["w4"] + params["b4"])
    g = jax.nn.relu(g @ params["w5"] + params["b5"])
    q2 = g @ params["w6"] + params["b6"]
    return q1, q2


if __name__ == "__main__":
    # Small DIAYN-style shapes: state(16) + context(8) = num_inputs(24),
    # action dim = num_actions(8), hidden_dim = 32, batch = 8.
    batch = 8
    state_dim, context_dim, action_dim = 16, 8, 8
    num_inputs = state_dim + context_dim
    num_actions = action_dim
    hidden_dim = 32

    key = jax.random.PRNGKey(0)
    k_param, k_s, k_c, k_a = jax.random.split(key, 4)

    params = init_qnetwork_params(k_param, num_inputs, num_actions, hidden_dim)
    slab = pack_qnetwork_params(params)          # one-time repack

    state = jax.random.normal(k_s, (batch, state_dim), jnp.float32)
    context = jax.random.normal(k_c, (batch, context_dim), jnp.float32)
    action = jax.random.normal(k_a, (batch, action_dim), jnp.float32)

    q1, q2 = qnetwork_forward(slab, state, context, action)
    jax.block_until_ready((q1, q2))

    r1, r2 = _reference_forward(params, state, context, action)
    assert q1.shape == (batch, 1) and q2.shape == (batch, 1)
    # f32 throughout; only summation order differs (split first matmul), so a
    # tight tolerance still holds.
    assert jnp.allclose(q1, r1, atol=1e-4, rtol=1e-4)
    assert jnp.allclose(q2, r2, atol=1e-4, rtol=1e-4)

    print("KERNEL_OK")
</pallas_src>

<mosaic_0001>
module attributes {stable_mosaic.version = 11 : i64} {
  func.func @_qnet_kernel(%arg0: i32, %arg1: memref<8x16xf32, #tpu.memory_space<vmem>>, %arg2: memref<8x8xf32, #tpu.memory_space<vmem>>, %arg3: memref<8x8xf32, #tpu.memory_space<vmem>>, %arg4: memref<163x64xf32, #tpu.memory_space<vmem>>, %arg5: memref<8x2xf32, #tpu.memory_space<vmem>>) attributes {dimension_semantics = [#tpu.dimension_semantics<parallel>], iteration_bounds = array<i64: 1>, scalar_prefetch = 0 : i64, scratch_operands = 0 : i64, tpu.core_type = #tpu.core_type<tc>, window_params = [{transform_indices = @transform_0, window_bounds = array<i64: 8, 16>}, {transform_indices = @transform_1, window_bounds = array<i64: 8, 8>}, {transform_indices = @transform_2, window_bounds = array<i64: 8, 8>}, {pipeline_mode = #tpu.pipeline_mode<synchronous>, transform_indices = @transform_3, window_bounds = array<i64: 163, 64>}, {transform_indices = @transform_4, window_bounds = array<i64: 8, 2>}]} {
    %c0 = arith.constant 0 : index
    %c0_0 = arith.constant 0 : index
    %0 = vector.load %arg4[%c0, %c0_0] : memref<163x64xf32, #tpu.memory_space<vmem>>, vector<16x64xf32>
    %c16 = arith.constant 16 : index
    %c0_1 = arith.constant 0 : index
    %1 = vector.load %arg4[%c16, %c0_1] : memref<163x64xf32, #tpu.memory_space<vmem>>, vector<8x64xf32>
    %c24 = arith.constant 24 : index
    %c0_2 = arith.constant 0 : index
    %2 = vector.load %arg4[%c24, %c0_2] : memref<163x64xf32, #tpu.memory_space<vmem>>, vector<8x64xf32>
    %c32 = arith.constant 32 : index
    %c0_3 = arith.constant 0 : index
    %3 = vector.load %arg4[%c32, %c0_3] : memref<163x64xf32, #tpu.memory_space<vmem>>, vector<64x64xf32>
    %c96 = arith.constant 96 : index
    %c0_4 = arith.constant 0 : index
    %4 = vector.load %arg4[%c96, %c0_4] : memref<163x64xf32, #tpu.memory_space<vmem>>, vector<64x64xf32>
    %c160 = arith.constant 160 : index
    %c0_5 = arith.constant 0 : index
    %5 = vector.load %arg4[%c160, %c0_5] : memref<163x64xf32, #tpu.memory_space<vmem>>, vector<1x64xf32>
    %c161 = arith.constant 161 : index
    %c0_6 = arith.constant 0 : index
    %6 = vector.load %arg4[%c161, %c0_6] : memref<163x64xf32, #tpu.memory_space<vmem>>, vector<1x64xf32>
    %c162 = arith.constant 162 : index
    %c0_7 = arith.constant 0 : index
    %7 = vector.load %arg4[%c162, %c0_7] : memref<163x64xf32, #tpu.memory_space<vmem>>, vector<1x64xf32>
    %c0_8 = arith.constant 0 : index
    %c0_9 = arith.constant 0 : index
    %8 = vector.load %arg1[%c0_8, %c0_9] : memref<8x16xf32, #tpu.memory_space<vmem>>, vector<8x16xf32>
    %cst = arith.constant dense<0.000000e+00> : vector<8x64xf32>
    %9 = tpu.matmul %8, %0, %cst {dimension_numbers = #tpu.dot_dimension_numbers<[1], [0], [0], [1], [0, 0, 1, 1], [], []>} : vector<8x16xf32>, vector<16x64xf32>, vector<8x64xf32> -> vector<8x64xf32>
    %c0_10 = arith.constant 0 : index
    %c0_11 = arith.constant 0 : index
    %10 = vector.load %arg2[%c0_10, %c0_11] : memref<8x8xf32, #tpu.memory_space<vmem>>, vector<8x8xf32>
    %cst_12 = arith.constant dense<0.000000e+00> : vector<8x64xf32>
    %11 = tpu.matmul %10, %1, %cst_12 {dimension_numbers = #tpu.dot_dimension_numbers<[1], [0], [0], [1], [0, 0, 1, 1], [], []>} : vector<8x8xf32>, vector<8x64xf32>, vector<8x64xf32> -> vector<8x64xf32>
    %12 = arith.addf %9, %11 : vector<8x64xf32>
    %c0_13 = arith.constant 0 : index
    %c0_14 = arith.constant 0 : index
    %13 = vector.load %arg3[%c0_13, %c0_14] : memref<8x8xf32, #tpu.memory_space<vmem>>, vector<8x8xf32>
    %cst_15 = arith.constant dense<0.000000e+00> : vector<8x64xf32>
    %14 = tpu.matmul %13, %2, %cst_15 {dimension_numbers = #tpu.dot_dimension_numbers<[1], [0], [0], [1], [0, 0, 1, 1], [], []>} : vector<8x8xf32>, vector<8x64xf32>, vector<8x64xf32> -> vector<8x64xf32>
    %15 = arith.addf %12, %14 : vector<8x64xf32>
    %16 = vector.broadcast %5 : vector<1x64xf32> to vector<8x64xf32>
    %17 = arith.addf %15, %16 : vector<8x64xf32>
    %cst_16 = arith.constant 0.000000e+00 : f32
    %18 = vector.broadcast %cst_16 : f32 to vector<8x64xf32>
    %19 = arith.maximumf %17, %18 : vector<8x64xf32>
    %cst_17 = arith.constant dense<0.000000e+00> : vector<8x64xf32>
    %20 = tpu.matmul %19, %3, %cst_17 {dimension_numbers = #tpu.dot_dimension_numbers<[1], [0], [0], [1], [0, 0, 1, 1], [], []>} : vector<8x64xf32>, vector<64x64xf32>, vector<8x64xf32> -> vector<8x64xf32>
    %21 = vector.broadcast %6 : vector<1x64xf32> to vector<8x64xf32>
    %22 = arith.addf %20, %21 : vector<8x64xf32>
    %cst_18 = arith.constant 0.000000e+00 : f32
    %23 = vector.broadcast %cst_18 : f32 to vector<8x64xf32>
    %24 = arith.maximumf %22, %23 : vector<8x64xf32>
    %cst_19 = arith.constant dense<0.000000e+00> : vector<8x64xf32>
    %25 = tpu.matmul %24, %4, %cst_19 {dimension_numbers = #tpu.dot_dimension_numbers<[1], [0], [0], [1], [0, 0, 1, 1], [], []>} : vector<8x64xf32>, vector<64x64xf32>, vector<8x64xf32> -> vector<8x64xf32>
    %26 = vector.extract_strided_slice %25 {offsets = [0, 0], sizes = [8, 2], strides = [1, 1]} : vector<8x64xf32> to vector<8x2xf32>
    %27 = vector.extract_strided_slice %7 {offsets = [0, 0], sizes = [1, 2], strides = [1, 1]} : vector<1x64xf32> to vector<1x2xf32>
    %28 = vector.broadcast %27 : vector<1x2xf32> to vector<8x2xf32>
    %29 = arith.addf %26, %28 : vector<8x2xf32>
    %c0_20 = arith.constant 0 : index
    %c0_21 = arith.constant 0 : index
    %30 = vector.load %arg5[%c0_20, %c0_21] : memref<8x2xf32, #tpu.memory_space<vmem>>, vector<8x2xf32>
    tpu.vector_store %arg5[%c0_20, %c0_21], %29 {strides = array<i32>} : memref<8x2xf32, #tpu.memory_space<vmem>>, vector<8x2xf32>,
    return
  }
  func.func @transform_0(%arg0: i32) -> (i32, i32) {
    %c0_i32 = arith.constant 0 : i32
    %c0_i32_0 = arith.constant 0 : i32
    return %arg0, %c0_i32 : i32, i32
  }
  func.func @transform_1(%arg0: i32) -> (i32, i32) {
    %c0_i32 = arith.constant 0 : i32
    %c0_i32_0 = arith.constant 0 : i32
    return %arg0, %c0_i32 : i32, i32
  }
  func.func @transform_2(%arg0: i32) -> (i32, i32) {
    %c0_i32 = arith.constant 0 : i32
    %c0_i32_0 = arith.constant 0 : i32
    return %arg0, %c0_i32 : i32, i32
  }
  func.func @transform_3(%arg0: i32) -> (i32, i32) {
    %c0_i32 = arith.constant 0 : i32
    %c0_i32_0 = arith.constant 0 : i32
    %c0_i32_1 = arith.constant 0 : i32
    return %c0_i32, %c0_i32_0 : i32, i32
  }
  func.func @transform_4(%arg0: i32) -> (i32, i32) {
    %c0_i32 = arith.constant 0 : i32
    %c0_i32_0 = arith.constant 0 : i32
    return %arg0, %c0_i32 : i32, i32
  }
}

</mosaic_0001>

<bundles_post_ra>
// kernel: tpu_custom_call.1
= control target key start
LH: loop header
LB: loop body
LE: loop exit
PB: predicated region body
PF: predicated region fallthrough
CT: control target
= control target key end

     0   :  { %vm42_vm0 = vcmask 64512   ;;  %vm66_vm1 = vcmask 130048   ;;  %vm119_vm2 = vcmask 523264   ;;  %vm169_vm3 = vcmask 15360   ;;  %s291_s3 = inlined_call_operand.vmem [shape: f32[163,64], index: 3, kind: input, shape index: {}]   ;;  %s292_s1 = inlined_call_operand.vmem [shape: f32[8,8], index: 1, kind: input, shape index: {}]   ;;  %s293_s0 = inlined_call_operand.vmem [shape: f32[8,16], index: 0, kind: input, shape index: {}]   ;;  %s294_s2 = inlined_call_operand.vmem [shape: f32[8,8], index: 2, kind: input, shape index: {}]   ;;  %s295_s4 = inlined_call_operand.vmem [shape: f32[8,2], index: 4, kind: output, shape index: {}]  }
   0x1   :  { %v19_v0 = vld [vmem:[%s291_s3 + $0x10] sm:$0xff]  ;;  %v41_v1 = vld [vmem:[%s292_s1] sm:$0xff]  ;;  %v20_v2 = vld [vmem:[%s291_s3 + $0x18] sm:$0xff] }
   0x2   :  { %61 = vmatpush.msra.mxu2 %v19_v0  ;;  %v18_v3 = vld [vmem:[%s291_s3 + $0x8] sm:$0xff]  ;;  %v17_v4 = vld [vmem:[%s291_s3] sm:$0xff]  ;;  %v28_v7 = vld [vmem:[%s291_s3 + $0x58] sm:$0xff] }
   0x3   :  { %175 = vmatmul.msk.f32.vlgmr.msra.gmra.mxu2 %vm42_vm0, %v41_v1  ;;  %84 = vmatpush.msra.mxu1 %v18_v3  ;;  %v40_v5 = vld [vmem:[%s293_s0] sm:$0xff]  ;;  %v27_v8 = vld [vmem:[%s291_s3 + $0x50] sm:$0xff]  ;;  %v26_v9 = vld [vmem:[%s291_s3 + $0x48] sm:$0xff] }
   0x4   :  { %109 = vmatpush.msrb.mxu2 %v20_v2  ;;  %v90_v6 = vld [vmem:[%s294_s2] sm:$0xff]  ;;  %131 = vmatpush.msra.mxu3 %v28_v7  ;;  %v24_v11 = vld [vmem:[%s291_s3 + $0x38] sm:$0xff]  ;;  %v23_v12 = vld [vmem:[%s291_s3 + $0x30] sm:$0xff] }
   0x5   :  { %85 = vmatpush.msra.mxu1 %v17_v4  ;;  %v25_v10 = vld [vmem:[%s291_s3 + $0x40] sm:$0xff]  ;;  %v22_v13 = vld [vmem:[%s291_s3 + $0x28] sm:$0xff]  ;;  %v36_v15 = vld [vmem:[%s291_s3 + $0x98] sm:$0xff] }
   0x6   :  { %176 = vmatmul.msk.f32.vlgmr.msra.gmra.mxu1 %vm66_vm1, %v40_v5  ;;  %132 = vmatpush.msra.mxu3 %v27_v8  ;;  %v21_v14 = vld [vmem:[%s291_s3 + $0x20] sm:$0xff]  ;;  %v35_v16 = vld [vmem:[%s291_s3 + $0x90] sm:$0xff]  ;;  %v34_v17 = vld [vmem:[%s291_s3 + $0x88] sm:$0xff] }
   0x7   :  { %155 = vmatpush.msra.mxu0 %v36_v15  ;;  %v33_v18 = vld [vmem:[%s291_s3 + $0x80] sm:$0xff]  ;;  %v32_v19 = vld [vmem:[%s291_s3 + $0x78] sm:$0xff]  ;;  %v31_v28 = vld [vmem:[%s291_s3 + $0x70] sm:$0xff] }
   0x8   :  { %133 = vmatpush.msra.mxu3 %v26_v9  ;;  %v180_v23 = vld [vmem:[%s291_s3 + $0xa0] ss:$0 sm:$0xff]  ;;  %v30_v29 = vld [vmem:[%s291_s3 + $0x68] sm:$0xff]  ;;  %v181_v31 = vld [vmem:[%s291_s3 + $0xa1] ss:$0 sm:$0xff] }
   0x9   :  { %156 = vmatpush.msra.mxu0 %v35_v16  ;;  %v29_v30 = vld [vmem:[%s291_s3 + $0x60] sm:$0xff] }
   0xa   :  { %134 = vmatpush.msra.mxu3 %v25_v10  ;;  %v182_v35 = vld [vmem:[%s291_s3 + $0xa2] ss:$0 sm:$0xff] }
   0xb   :  { %177 = vmatmul.msk.f32.vlgmr.msrb.gmra.mxu2 %vm42_vm0, %v90_v6  ;;  %157 = vmatpush.msra.mxu0 %v34_v17 }
   0xc   :  { %135 = vmatpush.msra.mxu3 %v24_v11 }
   0xd   :  { %158 = vmatpush.msra.mxu0 %v33_v18 }
   0xe   :  { %136 = vmatpush.msra.mxu3 %v23_v12 }
   0xf   :  { %159 = vmatpush.msra.mxu0 %v32_v19 }
  0x10   :  { %137 = vmatpush.msra.mxu3 %v22_v13 }
  0x11   :  { %160 = vmatpush.msra.mxu0 %v31_v28 }
  0x12   :  { %138 = vmatpush.msra.mxu3 %v21_v14 }
  0x13   :  { %161 = vmatpush.msra.mxu0 %v30_v29 }
  0x15   :  { %162 = vmatpush.msra.mxu0 %v29_v30 }
  0x83   :  { %v87_v21 = vpop.f32.mrf.mxu1 }
  0x86   :  { %v63_v20 = vpop.f32.mrf.mxu2 }
  0x87   :  { %v88_v22 = vadd.f32 %v87_v21, %v63_v20 }
  0x8e   :  { %v111_v24 = vpop.f32.mrf.mxu2 }
  0x8f   :  { %v114_v25 = vadd.f32 %v111_v24, %v88_v22 }
  0x91   :  { %v116_v26 = vadd.f32 %v180_v23, %v114_v25 }
  0x93   :  { %v117_v27 = vmax.f32 %v116_v26, 0.0 }
  0x95   :  { %178 = vmatmul.msk.f32.vlgmr.msra.gmra.mxu3 %vm119_vm2, %v117_v27 }
 0x118   :  { %v140_v32 = vpop.f32.mrf.mxu3 }
 0x119   :  { %v141_v33 = vadd.f32 %v181_v31, %v140_v32 }
 0x11b   :  { %v143_v34 = vmax.f32 %v141_v33, 0.0 }
 0x11d   :  { %179 = vmatmul.msk.f32.vlgmr.msra.gmra.mxu0 %vm119_vm2, %v143_v34 }
 0x19a   :  { %v164_v36 = vpop.f32.mrf.mxu0 }
 0x19b   :  { %v168_v37 = vadd.f32 %v182_v35, %v164_v36 }
 0x19d   :  { %170 = vst.msk [vmem:[%s295_s4] sm:$0xff] %vm169_vm3, %v168_v37 }

</bundles_post_ra>
